<compile_context>
chip_gen: v5e
topology: v5e:2x2
jax: 0.10.0
libtpu: 0.0.40
codegen_flags: <defaults>
</compile_context>

<pallas_src>
from typing import NamedTuple

import jax
import jax.numpy as jnp
from jax.experimental import pallas as pl
from jax.experimental.pallas import tpu as pltpu


def _round_up(n, m):
    return ((n + m - 1) // m) * m


def _vmem_capacity_bytes():
    try:
        return int(pltpu.get_tpu_info().vmem_capacity_bytes)
    except Exception:
        return 64 << 20  # conservative fallback (v7x per-TensorCore VMEM)


# --------------------------------------------------------------------------- kernel
def highway_kernel(x_ref, w_ref, b_ref, o_ref):
    tn = o_ref.shape[1]
    # One fused MXU matmul per (row-tile, col-tile): (tile_m, Dp) @ (Dp, 2*tn),
    # bf16 operands, f32 accumulation.  Columns [:tn] = transform gate, [tn:] = candidate.
    z = jnp.dot(x_ref[...].astype(jnp.bfloat16), w_ref[...],
                preferred_element_type=jnp.float32) + b_ref[...]
    t = jax.nn.sigmoid(z[:, :tn])        # EUP transcendental (free slot while mem-bound)
    h = jnp.maximum(z[:, tn:], 0.0)      # VPU

    # Residual slice of x matching this output column tile (lane-aligned).
    col = pl.multiple_of(pl.program_id(1) * tn, 128)
    xc = x_ref[:, pl.ds(col, tn)].astype(jnp.float32)

    # highway mix:  t*h + (1-t)*x  ==  x + t*(h - x)   (3 VPU ops)
    o_ref[...] = (xc + t * (h - xc)).astype(o_ref.dtype)


# ------------------------------------------------------------------- parameter prep
class HighwayParams(NamedTuple):
    w: jax.Array      # (Dp, 2*Dp) bf16, gate/candidate columns interleaved per tile_n block
    b: jax.Array      # (1, 2*Dp) f32, same interleave
    d: int            # original feature size
    d_pad: int        # feature size padded to a multiple of 128
    tile_n: int       # output-feature tile (128-multiple divisor of d_pad)


def _pick_tile_n(d_pad, budget):
    """Largest 128-multiple divisor of d_pad whose fused weight block(s) fit in budget/3."""
    m = d_pad // 128
    for div in range(m, 0, -1):
        if m % div:
            continue
        tn = 128 * div
        nbuf = 1 if tn == d_pad else 2            # resident vs. double-buffered weight
        if d_pad * (2 * tn) * 2 * nbuf <= budget // 3:
            return tn
    return 128


def prepare_highway_params(wt, bt, wh, bh):
    """Build the fused, padded, bf16, column-interleaved weight ONCE (hoisted out of forward)."""
    D = wt.shape[0]
    Dp = _round_up(D, 128)
    budget = int(0.75 * _vmem_capacity_bytes())
    tile_n = _pick_tile_n(Dp, budget)
    ncb = Dp // tile_n

    wt_p = jnp.zeros((Dp, Dp), jnp.float32).at[:D, :D].set(wt.astype(jnp.float32))
    wh_p = jnp.zeros((Dp, Dp), jnp.float32).at[:D, :D].set(wh.astype(jnp.float32))
    bt_p = jnp.zeros((Dp,), jnp.float32).at[:D].set(jnp.reshape(bt, (-1,)).astype(jnp.float32))
    bh_p = jnp.zeros((Dp,), jnp.float32).at[:D].set(jnp.reshape(bh, (-1,)).astype(jnp.float32))

    # Interleave gate / candidate columns per tile_n block:  [ g_0 | c_0 | g_1 | c_1 | ... ]
    # so a single (Dp, 2*tile_n) block holds both projections for the same output features.
    w = jnp.stack([wt_p.reshape(Dp, ncb, tile_n),
                   wh_p.reshape(Dp, ncb, tile_n)], axis=2).reshape(Dp, 2 * Dp)
    b = jnp.stack([bt_p.reshape(ncb, tile_n),
                   bh_p.reshape(ncb, tile_n)], axis=1).reshape(1, 2 * Dp)
    return HighwayParams(w.astype(jnp.bfloat16), b, D, Dp, tile_n)


# ------------------------------------------------------------------------- tiling
def _pick_tile_m(n_rows, d_pad, tile_n, ncb, budget, x_bytes, out_bytes, tile_m):
    tile_m = max(8, min(_round_up(tile_m, 8), _round_up(n_rows, 8)))
    w_nbuf = 1 if ncb == 1 else 2

    def est(tm):
        w = d_pad * (2 * tile_n) * 2 * w_nbuf          # bf16 fused weight block(s)
        b = (2 * tile_n) * 4 * w_nbuf                  # f32 fused bias block(s)
        x_io = 2 * tm * d_pad * x_bytes                # x tile, double-buffered
        o_io = 2 * tm * tile_n * out_bytes             # out tile, double-buffered
        tmp = tm * (2 * tile_n) * 4                    # f32 matmul result z
        tmp += tm * d_pad * 2                          # bf16 copy of x for the MXU
        tmp += 3 * tm * tile_n * 4                     # t / h / mix temporaries (f32)
        return w + b + x_io + o_io + tmp + (2 << 20)   # + slack

    while tile_m > 8 and est(tile_m) > budget:
        tile_m = max(8, ((tile_m // 2) // 8) * 8)

    # v7x has 2 TensorCores: make sure the "parallel" grid has at least 2 steps.
    if ncb * pl.cdiv(n_rows, tile_m) < 2 and n_rows > 8:
        tile_m = _round_up(pl.cdiv(n_rows, 2), 8)
    return tile_m, est(tile_m)


# ------------------------------------------------------------------------- forward
def highway_forward(x, params: HighwayParams, *, tile_m=512):
    """x: [..., D] (f32 or bf16). params: from prepare_highway_params."""
    D, Dp, tile_n = params.d, params.d_pad, params.tile_n
    assert x.shape[-1] == D
    orig_shape = x.shape
    x2 = x.reshape(-1, D)
    N = x2.shape[0]
    if Dp != D:
        # Padded lanes must be zero (zero weight rows then keep them inert).
        x2 = jnp.pad(x2, ((0, 0), (0, Dp - D)))

    ncb = Dp // tile_n
    capacity = _vmem_capacity_bytes()
    budget = int(0.75 * capacity)
    tile_m, est = _pick_tile_m(N, Dp, tile_n, ncb, budget,
                               x2.dtype.itemsize, x.dtype.itemsize, tile_m)
    vmem_limit = int(min(capacity - (8 << 20), max(2 * est, 32 << 20)))

    grid = (pl.cdiv(N, tile_m), ncb)     # ragged last row block handled by Pallas
    resident = (ncb == 1)
    w_kw = dict(pipeline_mode=pl.Buffered(1)) if resident else {}

    out = pl.pallas_call(
        highway_kernel,
        out_shape=jax.ShapeDtypeStruct((N, Dp), x.dtype),
        grid_spec=pltpu.PrefetchScalarGridSpec(
            num_scalar_prefetch=0,
            grid=grid,
            in_specs=[
                pl.BlockSpec((tile_m, Dp), lambda i, j: (i, 0)),              # x rows (reused over j)
                pl.BlockSpec((Dp, 2 * tile_n), lambda i, j: (0, j), **w_kw),  # fused W column block
                pl.BlockSpec((1, 2 * tile_n), lambda i, j: (0, j), **w_kw),   # fused bias column block
            ],
            out_specs=pl.BlockSpec((tile_m, tile_n), lambda i, j: (i, j)),
        ),
        compiler_params=pltpu.CompilerParams(
            dimension_semantics=("parallel", "parallel"),
            vmem_limit_bytes=vmem_limit,
        ),
    )(x2, params.w, params.b)

    if Dp != D:
        out = out[:, :D]
    return out.reshape(orig_shape)


# --------------------------------------------------------------------- test helpers
def init_highway_params(key, input_size):
    """Deterministic init mimicking nn.Linear default (uniform +/- 1/sqrt(fan_in))."""
    k1, k2, k3, k4 = jax.random.split(key, 4)
    bound = 1.0 / jnp.sqrt(jnp.float32(input_size))
    # stored transposed: [D_in, D_out]
    wt = jax.random.uniform(k1, (input_size, input_size), jnp.float32, -bound, bound)
    bt = jax.random.uniform(k2, (1, input_size), jnp.float32, -bound, bound)
    wh = jax.random.uniform(k3, (input_size, input_size), jnp.float32, -bound, bound)
    bh = jax.random.uniform(k4, (1, input_size), jnp.float32, -bound, bound)
    return wt, bt, wh, bh


def highway_reference(x, wt, bt, wh, bh):
    t = jax.nn.sigmoid(x @ wt + bt)
    h = jnp.maximum(x @ wh + bh, 0.0)
    return t * h + (1.0 - t) * x


if __name__ == "__main__":
    key = jax.random.PRNGKey(0)
    kx, kp, kx2 = jax.random.split(key, 3)

    B, S, D = 2, 8, 128          # batch=2, seq=8, hidden=128
    x = jax.random.normal(kx, (B, S, D), dtype=jnp.float32)
    wt, bt, wh, bh = init_highway_params(kp, D)
    params = prepare_highway_params(wt, bt, wh, bh)   # fused bf16 weight built once

    out = jax.block_until_ready(highway_forward(x, params))
    ref = highway_reference(x, wt, bt, wh, bh)
    assert out.shape == x.shape and out.dtype == x.dtype
    err = float(jnp.max(jnp.abs(out - ref)))
    assert jnp.allclose(out, ref, atol=2e-2, rtol=2e-2), f"mismatch vs reference: {err}"

    # Ragged row count (N = 15, not a multiple of the row tile) -> exercises the
    # partial-last-block path that replaced host-side row padding.
    x_odd = jax.random.normal(kx2, (3, 5, D), dtype=jnp.float32)
    out_odd = jax.block_until_ready(highway_forward(x_odd, params))
    ref_odd = highway_reference(x_odd, wt, bt, wh, bh)
    err_odd = float(jnp.max(jnp.abs(out_odd - ref_odd)))
    assert jnp.allclose(out_odd, ref_odd, atol=2e-2, rtol=2e-2), f"ragged mismatch: {err_odd}"

    # bf16 I/O path (half the HBM bytes on x / out); sanity check only.
    out_bf16 = jax.block_until_ready(highway_forward(x.astype(jnp.bfloat16), params))
    assert out_bf16.shape == x.shape and out_bf16.dtype == jnp.bfloat16
    assert bool(jnp.all(jnp.isfinite(out_bf16.astype(jnp.float32))))

    print("KERNEL_OK")
</pallas_src>

<mosaic_0001>
module attributes {stable_mosaic.version = 11 : i64} {
  func.func @highway_kernel(%arg0: i32, %arg1: i32, %arg2: memref<8x128xf32, #tpu.memory_space<vmem>>, %arg3: memref<128x256xbf16, #tpu.memory_space<vmem>>, %arg4: memref<1x256xf32, #tpu.memory_space<vmem>>, %arg5: memref<8x128xf32, #tpu.memory_space<vmem>>) attributes {dimension_semantics = [#tpu.dimension_semantics<parallel>, #tpu.dimension_semantics<parallel>], iteration_bounds = array<i64: 2, 1>, scalar_prefetch = 0 : i64, scratch_operands = 0 : i64, tpu.core_type = #tpu.core_type<tc>, window_params = [{transform_indices = @transform_0, window_bounds = array<i64: 8, 128>}, {pipeline_mode = #tpu.pipeline_mode<synchronous>, transform_indices = @transform_1, window_bounds = array<i64: 128, 256>}, {pipeline_mode = #tpu.pipeline_mode<synchronous>, transform_indices = @transform_2, window_bounds = array<i64: 1, 256>}, {transform_indices = @transform_3, window_bounds = array<i64: 8, 128>}]} {
    %c0 = arith.constant 0 : index
    %c0_0 = arith.constant 0 : index
    %0 = vector.load %arg2[%c0, %c0_0] : memref<8x128xf32, #tpu.memory_space<vmem>>, vector<8x128xf32>
    %1 = arith.truncf %0 : vector<8x128xf32> to vector<8x128xbf16>
    %c0_1 = arith.constant 0 : index
    %c0_2 = arith.constant 0 : index
    %2 = vector.load %arg3[%c0_1, %c0_2] : memref<128x256xbf16, #tpu.memory_space<vmem>>, vector<128x256xbf16>
    %cst = arith.constant dense<0.000000e+00> : vector<8x256xf32>
    %3 = tpu.matmul %1, %2, %cst {dimension_numbers = #tpu.dot_dimension_numbers<[1], [0], [0], [1], [0, 0, 1, 1], [], []>} : vector<8x128xbf16>, vector<128x256xbf16>, vector<8x256xf32> -> vector<8x256xf32>
    %c0_3 = arith.constant 0 : index
    %c0_4 = arith.constant 0 : index
    %4 = vector.load %arg4[%c0_3, %c0_4] : memref<1x256xf32, #tpu.memory_space<vmem>>, vector<1x256xf32>
    %5 = vector.broadcast %4 : vector<1x256xf32> to vector<8x256xf32>
    %6 = arith.addf %3, %5 : vector<8x256xf32>
    %7 = vector.extract_strided_slice %6 {offsets = [0, 0], sizes = [8, 128], strides = [1, 1]} : vector<8x256xf32> to vector<8x128xf32>
    %8 = arith.negf %7 : vector<8x128xf32>
    %9 = math.exp %8 : vector<8x128xf32>
    %cst_5 = arith.constant 1.000000e+00 : f32
    %10 = vector.broadcast %cst_5 : f32 to vector<8x128xf32>
    %11 = arith.addf %10, %9 : vector<8x128xf32>
    %12 = arith.divf %10, %11 : vector<8x128xf32>
    %13 = vector.extract_strided_slice %6 {offsets = [0, 128], sizes = [8, 128], strides = [1, 1]} : vector<8x256xf32> to vector<8x128xf32>
    %cst_6 = arith.constant 0.000000e+00 : f32
    %14 = vector.broadcast %cst_6 : f32 to vector<8x128xf32>
    %15 = arith.maximumf %13, %14 : vector<8x128xf32>
    %c128_i32 = arith.constant 128 : i32
    %16 = arith.muli %arg1, %c128_i32 : i32
    %17 = tpu.assume_multiple %16, 128 : i32
    %c0_7 = arith.constant 0 : index
    %18 = arith.index_cast %17 : i32 to index
    %19 = vector.load %arg2[%c0_7, %18] : memref<8x128xf32, #tpu.memory_space<vmem>>, vector<8x128xf32>
    %20 = arith.subf %15, %19 : vector<8x128xf32>
    %21 = arith.mulf %12, %20 : vector<8x128xf32>
    %22 = arith.addf %19, %21 : vector<8x128xf32>
    %c0_8 = arith.constant 0 : index
    %c0_9 = arith.constant 0 : index
    %23 = vector.load %arg5[%c0_8, %c0_9] : memref<8x128xf32, #tpu.memory_space<vmem>>, vector<8x128xf32>
    tpu.vector_store %arg5[%c0_8, %c0_9], %22 {strides = array<i32>} : memref<8x128xf32, #tpu.memory_space<vmem>>, vector<8x128xf32>,
    return
  }
  func.func @transform_0(%arg0: i32, %arg1: i32) -> (i32, i32) {
    %c0_i32 = arith.constant 0 : i32
    %c0_i32_0 = arith.constant 0 : i32
    return %arg0, %c0_i32 : i32, i32
  }
  func.func @transform_1(%arg0: i32, %arg1: i32) -> (i32, i32) {
    %c0_i32 = arith.constant 0 : i32
    %c0_i32_0 = arith.constant 0 : i32
    return %c0_i32, %arg1 : i32, i32
  }
  func.func @transform_2(%arg0: i32, %arg1: i32) -> (i32, i32) {
    %c0_i32 = arith.constant 0 : i32
    %c0_i32_0 = arith.constant 0 : i32
    return %c0_i32, %arg1 : i32, i32
  }
  func.func @transform_3(%arg0: i32, %arg1: i32) -> (i32, i32) {
    %c0_i32 = arith.constant 0 : i32
    return %arg0, %arg1 : i32, i32
  }
}

</mosaic_0001>

<bundles_post_ra>
// kernel: tpu_custom_call.1
= control target key start
LH: loop header
LB: loop body
LE: loop exit
PB: predicated region body
PF: predicated region fallthrough
CT: control target
= control target key end

     0   :  { %8 = vsyncpa [#allocation3], 0  ;;  %s1069_s0 = inlined_call_operand.hbm [shape: f32[16,128], index: 0, kind: input, shape index: {}]   ;;  %s1070_s1 = inlined_call_operand.hbm [shape: bf16[128,256], index: 1, kind: input, shape index: {}]   ;;  %s1071_s2 = inlined_call_operand.hbm [shape: f32[1,256], index: 2, kind: input, shape index: {}]   ;;  %s1072_s3 = inlined_call_operand.hbm [shape: f32[16,128], index: 3, kind: output, shape index: {}]  }
   0x1   :  { %10 = vsyncpa [#allocation3 + $0x1], 0 }
   0x2   :  { %11 = vsyncpa [#allocation6], 0 }
   0x3   :  { %12 = vsyncpa [#allocation4], 0 }
   0x4   :  { %14 = vsyncpa [#allocation4 + $0x1], 0  ;;  %s918_s12 = smov 0   ;;  %s920_s13 = smov 0  }
   0x5   :  { %s922_s14 = smov 0   ;;  %s924_s15 = smov 0  }
   0x6   :  { %s926_s16 = smov 0   ;;  %s928_s17 = smov 0  }
   0x7 LB: > { %s529_s18 = sadd.s32 4294967295, %s892_s17   ;;  %p531_p0 = scmp.ge.s32.totalorder %s892_s17, 1  ;;  %s892_s17 = sphi %s928_s17, %s20_s17   ;;  %s888_s16 = sphi %s926_s16, %s1082_s16   ;;  %s884_s15 = sphi %s924_s15, %s1081_s15   ;;  %s880_s14 = sphi %s922_s14, %s1080_s14   ;;  %s876_s13 = sphi %s920_s13, %s1079_s13   ;;  %s872_s12 = sphi %s918_s12, %s1078_s12  }
   0x8   : > { %p952_p1 = scmp.eq.s32.totalorder %s529_s18, 0  ;;  %p143_p2 = scmp.lt.s32.totalorder %s892_s17, 3 }
   0x9   : > { %s157_s22 = sshll.u32 %s1070_s1, 4  ;;  %s894_s24 = smov [#allocation5]   ;;  %s158_s22 = int_to_ptr.hbm [resolvable:$true] %s157_s22 }
   0xa   : > { %p960_p3 = pnand %p531_p0, %p143_p2  ;;  %s159_s25 = sshll.u32 %s894_s24, 4  ;;  %s160_s25 = int_to_ptr.vmem [resolvable:$true] %s159_s25 }
   0xb   : > { %p534_p6 = scmp.ge.s32.totalorder %s892_s17, 2  ;;  %s174_s28 = sshll.u32 %s1071_s2, 4  ;;  %s175_s28 = int_to_ptr.hbm [resolvable:$true] %s174_s28 }
   0xc   : > { %p639_p4 = pneg %p960_p3  ;;  %s895_s29 = smov 128  }
   0xd   : > { %s896_s30 = smov 8   ;;  %s897_s4 = smov [#allocation7]  }
   0xe   : > { %p640_p5 = pnand %p639_p4, %p952_p1  ;;  %s176_s5 = sshll.u32 %s897_s4, 4  ;;  %s177_s5 = int_to_ptr.vmem [resolvable:$true] %s176_s5 }
   0xf   : > { %s32_s6 = sadd.s32 1, %s888_s16  ;;  %s530_s7 = sadd.s32 4294967294, %s892_s17  }
  0x10   : > { %642 = dma.hbm_to_vmem [thread:$0]  (!%p640_p5), %s158_s22, 2048, %s160_s25, [#allocation6], %s895_s29, %s895_s29, %s896_s30  }
  0x11   : > { %645 = dma.hbm_to_vmem [thread:$0]  (!%p640_p5), %s175_s28, 32, %s177_s5, [#allocation6]  }
  0x12   : > { %p34_p7 = scmp.ge.s32.totalorder %s32_s6, 2  ;;  %s39_s8 = sadd.s32 1, %s880_s14 }
  0x13   : > { %p46_p8 = scmp.ne.s32.totalorder %s880_s14, %s876_s13  ;;  %p47_p9 = scmp.eq.s32.totalorder %s892_s17, 0 }
  0x14   : > { %s1084_s6 = smov (%p34_p7, %s32_s6), 0  ;;  %p52_p10 = scmp.ne.s32.totalorder %s876_s13, %s872_s12 }
  0x15   : > { %s36_s9 = ssub.s32 %s888_s16, %s1084_s6  ;;  %p130_p11 = scmp.eq.s32.totalorder %s529_s18, 1 }
  0x16   : > { %p37_p12 = scmp.eq.s32.totalorder %s36_s9, 0  ;;  %p988_p13 = por %p952_p1, %p52_p10 }
  0x17   : > { %p992_p0 = por %p130_p11, %p46_p8  ;;  %p136_p2 = scmp.eq.s32.totalorder %s530_s7, 1 }
  0x18   : > { %s997_s20 = scalar_select %p37_p12, %s880_s14, %s39_s8  }
  0x19   : > { %p48_p4 = por %p47_p9, %p46_p8  ;;  %p999_p5 = por %p136_p2, %p52_p10 }
  0x1a   : > { %s187_s22 = sand.u32 1, %s880_s14   ;;  %s536_s18 = sshll.u32 %s888_s16, 3 }
  0x1b   : > { %p656_p7 = scmp.lt.s32.totalorder %s892_s17, 2  ;;  %s535_s24 = sshll.u32 %s187_s22, 3 }
  0x1c   : > { %s195_s27 = scalar_lea.hbm %s1069_s0, %s536_s18  ;;  %s191_s29 = scalar_lea.vmem [#allocation2], %s535_s24 }
  0x1d   : > { %s197_s28 = sshll.u32 %s195_s27, 4  ;;  %s199_s30 = sshll.u32 %s191_s29, 4  ;;  %s198_s28 = int_to_ptr.hbm [resolvable:$true] %s197_s28  ;;  %s200_s30 = int_to_ptr.vmem [resolvable:$true] %s199_s30 }
  0x1e   : > { %p647_p11 = pnand %p656_p7, %p48_p4  ;;  %s188_s4 = scalar_lea.sflag [#allocation3], %s187_s22 }
  0x1f   : > { %208 = sbr.rel (%p960_p3) target bundleno = 236 (0xec), region = 32  ;;  %s1012_s5 = sand.u32 (!%p960_p3), 1, %s876_s13  }
  0x20   : > { %649 = dma.hbm_to_vmem [thread:$0]  (!%p647_p11), %s198_s28, 128, %s200_s30, %s188_s4  }
  0x21   : > { %s538_s7 = sshll.u32 (!%p960_p3), %s1012_s5, 3  ;;  %s211_s8 = scalar_lea.sflag (!%p960_p3), [#allocation3], %s1012_s5 }
  0x22   : > { %s1018_s9 = scalar_lea.vmem (!%p960_p3), [#allocation2], %s538_s7 }
  0x24   : > { %859 = dma.done.wait (%p988_p13), %s211_s8, 128  }
  0x25   : > { %861 = vsyncadd (%p988_p13), %s211_s8, 4294967168 }
  0x26   : > { %863 = dma.done.wait (%p952_p1), [#allocation6], 2080  }
  0x27   : > { %865 = vsyncadd (%p952_p1), [#allocation6], 4294965216  ;;  %v600_v0 = vld [vmem:[#allocation5 + $0x70] sm:$0xf]  ;;  %v626_v1 = vld [vmem:[#allocation5 + $0x74] sm:$0xf0] }
  0x28   : > { %v592_v2 = vld [vmem:[#allocation5 + $0x60] sm:$0xf]  ;;  %v601_v3 = vor.u32 %v626_v1, %v600_v0  ;;  %v624_v4 = vld [vmem:[#allocation5 + $0x64] sm:$0xf0]  ;;  %v625_v6 = vld [vmem:[#allocation5 + $0x74] sm:$0xf] }
  0x29   : > { %v593_v5 = vor.u32 %v624_v4, %v592_v2  ;;  %v602_v7 = vld [vmem:[#allocation5 + $0x78] sm:$0xf0]  ;;  %v584_v8 = vld [vmem:[#allocation5 + $0x50] sm:$0xf]  ;;  %v622_v9 = vld [vmem:[#allocation5 + $0x54] sm:$0xf0] }
  0x2a   : > { %354 = vmatpush.bf16.msra.mxu0 %v601_v3  ;;  %v605_v10 = vor.u32 %v625_v6, %v602_v7  ;;  %v623_v11 = vld [vmem:[#allocation5 + $0x64] sm:$0xf]  ;;  %v594_v12 = vld [vmem:[#allocation5 + $0x68] sm:$0xf0]  ;;  %v585_v14 = vor.u32 %v622_v9, %v584_v8  ;;  %v621_v15 = vld [vmem:[#allocation5 + $0x54] sm:$0xf] }
  0x2b   : > { %v597_v13 = vor.u32 %v623_v11, %v594_v12  ;;  %v586_v16 = vld [vmem:[#allocation5 + $0x58] sm:$0xf0]  ;;  %v576_v17 = vld [vmem:[#allocation5 + $0x40] sm:$0xf]  ;;  %v620_v18 = vld [vmem:[#allocation5 + $0x44] sm:$0xf0] }
  0x2c   : > { %367 = vmatpush.bf16.msra.mxu1 %v605_v10  ;;  %v589_v19 = vor.u32 %v621_v15, %v586_v16  ;;  %v577_v20 = vor.u32 %v620_v18, %v576_v17  ;;  %v619_v21 = vld [vmem:[#allocation5 + $0x44] sm:$0xf]  ;;  %v578_v22 = vld [vmem:[#allocation5 + $0x48] sm:$0xf0]  ;;  %v568_v23 = vld [vmem:[#allocation5 + $0x30] sm:$0xf] }
  0x2d   : > { %v618_v24 = vld [vmem:[#allocation5 + $0x34] sm:$0xf0]  ;;  %v581_v25 = vor.u32 %v619_v21, %v578_v22  ;;  %v617_v27 = vld [vmem:[#allocation5 + $0x34] sm:$0xf]  ;;  %v570_v28 = vld [vmem:[#allocation5 + $0x38] sm:$0xf0] }
  0x2e   : > { %355 = vmatpush.bf16.msra.mxu0 %v593_v5  ;;  %v569_v26 = vor.u32 %v618_v24, %v568_v23  ;;  %v560_v29 = vld [vmem:[#allocation5 + $0x20] sm:$0xf]  ;;  %v616_v30 = vld [vmem:[#allocation5 + $0x24] sm:$0xf0]  ;;  %v573_v31 = vor.u32 %v617_v27, %v570_v28  ;;  %v615_v33 = vld [vmem:[#allocation5 + $0x24] sm:$0xf] }
  0x2f   : > { %v561_v32 = vor.u32 %v616_v30, %v560_v29  ;;  %v562_v34 = vld [vmem:[#allocation5 + $0x28] sm:$0xf0]  ;;  %v552_v35 = vld [vmem:[#allocation5 + $0x10] sm:$0xf]  ;;  %v614_v36 = vld [vmem:[#allocation5 + $0x14] sm:$0xf0] }
  0x30   : > { %368 = vmatpush.bf16.msra.mxu1 %v597_v13  ;;  %v565_v37 = vor.u32 %v615_v33, %v562_v34  ;;  %v553_v38 = vor.u32 %v614_v36, %v552_v35  ;;  %v613_v39 = vld [vmem:[#allocation5 + $0x14] sm:$0xf]  ;;  %v554_v40 = vld [vmem:[#allocation5 + $0x18] sm:$0xf0]  ;;  %v544_v41 = vld [vmem:[#allocation5] sm:$0xf] }
  0x31   : > { %v612_v42 = vld [vmem:[#allocation5 + $0x4] sm:$0xf0]  ;;  %v557_v43 = vor.u32 %v613_v39, %v554_v40  ;;  %v250_v45 = vld [vmem:[%s1018_s9] sm:$0xff]  ;;  %v611_v46 = vld [vmem:[#allocation5 + $0x4] sm:$0xf]  ;;  %s608_s19 = sshll.u32 %s884_s15, 3 }
  0x32   : > { %356 = vmatpush.bf16.msra.mxu0 %v585_v14  ;;  %v545_v44 = vor.u32 %v612_v42, %v544_v41  ;;  %v546_v47 = vld [vmem:[#allocation5 + $0x8] sm:$0xf0]  ;;  %v251_v48 = vpack.c.bf16 %v250_v45, %v250_v45  ;;  %v268_v50 = vld [vmem:[#allocation7] sm:$0x3]  ;;  %s421_s22 = scalar_lea.hbm %s1072_s3, %s608_s19  ;;  %s247_s18 = scalar_lea.vmem [#allocation8], %s538_s7 }
  0x33   : > { %v549_v49 = vor.u32 %v611_v46, %v546_v47  ;;  %v270_v51 = vperm.slane %v268_v50, 0  ;;  %v271_v60 = vperm.slane %v268_v50, 1  ;;  %s423_s15 = sshll.u32 %s247_s18, 4  ;;  %s425_s24 = sshll.u32 %s421_s22, 4  ;;  %s424_s15 = int_to_ptr.vmem [resolvable:$true] %s423_s15  ;;  %s426_s24 = int_to_ptr.hbm [resolvable:$true] %s425_s24 }
  0x34   : > { %369 = vmatpush.bf16.msra.mxu1 %v589_v19  ;;  %s410_s25 = scalar_lea.sflag [#allocation4], %s1012_s5  ;;  %s820_s26 = sshra.s32 %s426_s24, 4  ;;  %s821_s26 = int_to_ptr.hbm [resolvable:$true] %s820_s26 }
  0x35   : > { %s822_s27 = scalar_lea.hbm %s821_s26, 8  ;;  %s826_s30 = scalar_lea.hbm %s1072_s3, 16 }
  0x36   : > { %357 = vmatpush.bf16.msra.mxu0 %v577_v20  ;;  %p823_p1 = scmp.ne.s32.totalorder %s821_s26, %s822_s27  ;;  %p827_p9 = scmp.lt.s32.totalorder %s821_s26, %s1072_s3 }
  0x37   : > { %p828_p10 = scmp.lt.s32.totalorder %s826_s30, %s822_s27 }
  0x38   : > { %370 = vmatpush.bf16.msra.mxu1 %v581_v25  ;;  %p824_p3 = pnand %p823_p1, %p992_p0 }
  0x39   : > { %p829_p12 = por %p828_p10, %p827_p9 }
  0x3a   : > { %358 = vmatpush.bf16.msra.mxu0 %v569_v26  ;;  %p825_p8 = pneg %p824_p3 }
  0x3c   : > { %371 = vmatpush.bf16.msra.mxu1 %v573_v31  ;;  %p830_p13 = pnand %p829_p12, %p825_p8 }
  0x3e   : > { %359 = vmatpush.bf16.msra.mxu0 %v561_v32 }
  0x40   : > { %372 = vmatpush.bf16.msra.mxu1 %v565_v37 }
  0x42   : > { %360 = vmatpush.bf16.msra.mxu0 %v553_v38 }
  0x44   : > { %373 = vmatpush.bf16.msra.mxu1 %v557_v43 }
  0x46   : > { %361 = vmatpush.bf16.msra.mxu0 %v545_v44 }
  0x48   : > { %374 = vmatpush.bf16.msra.mxu1 %v549_v49 }
  0x49   : > { %362 = vmatmul.bf16.vlgmr.msra.gmra.mxu0 %v251_v48 }
  0x4b   : > { %375 = vmatmul.bf16.vlgmr.msra.gmra.mxu1 %v251_v48 }
  0xc6   : > { %v363_v52 = vpop.f32.mrf.mxu0 }
  0xc7   : > { %v364_v53 = vadd.f32 %v363_v52, %v270_v51 }
  0xc8   : > { %v376_v55 = vpop.f32.mrf.mxu1 }
  0xc9   : > { %v606_v54 = vmul.f32 -1.442695, %v364_v53  ;;  %v377_v61 = vadd.f32 %v376_v55, %v271_v60 }
  0xcb   : > { %712 = vpow2.f32 %v606_v54  ;;  %v399_v1 = vmax.f32 %v377_v61, 0.0 }
  0xcd   : > { %v405_v6 = vsub.f32 %v399_v1, %v250_v45 }
  0xce   : > { %v365_v56 = vpop.f32.mrf.mxu0 }
  0xd0   : > { %v378_v58 = vpop.f32.mrf.mxu1 }
  0xd1   : > { %v713_v57 = vpop.eup %712 }
  0xd2   : > { %v383_v59 = vadd.f32 1.0, %v713_v57 }
  0xd4   : > { %714 = vrcp.f32 %v383_v59  ;;  %v395_v2 = vand.u32 2147483648, %v383_v59  ;;  %v393_v4 = vand.u32 2147483647, %v383_v59  ;;  %vm389_vm1 = vweird.f32 %v383_v59 }
  0xd6   : > { %v396_v7 = vor.u32 1.1754944e-38, %v395_v2  ;;  %vm394_vm3 = vcmp.eq.f32.partialorder %v393_v4, 8.507059e+37 }
  0xda   : > { %v715_v62 = vpop.eup %714 }
  0xdb   : > { %v385_v63 = vmul.f32 %v715_v62, %v383_v59  ;;  %vm390_vm0 = vweird.f32 %v715_v62 }
  0xdc   : > { %vm391_vm2 = vmor %vm389_vm1, %vm390_vm0 }
  0xdd   : > { %v386_v0 = vsub.f32 1.0, %v385_v63 }
  0xdf   : > { %v387_v3 = vmul.f32 %v715_v62, %v386_v0 }
  0xe1   : > { %v388_v5 = vadd.f32 %v715_v62, %v387_v3 }
  0xe3   : > { %v392_v8 = vsel %vm391_vm2, %v715_v62, %v388_v5 }
  0xe4   : > { %v397_v9 = vsel %vm394_vm3, %v396_v7, %v392_v8 }
  0xe5   : > { %v406_v10 = vmul.f32 %v405_v6, %v397_v9 }
  0xe7   : > { %v407_v11 = vadd.f32 %v406_v10, %v250_v45 }
  0xe9   : > { %408 = vst [vmem:[%s247_s18] sm:$0xff] %v407_v11 }
  0xea   : > { %833 = shalt.err (!%p830_p13)
}
  0xeb   : > { %637 = dma.vmem_to_hbm [thread:$0]  (%p992_p0), %s424_s15, 128, %s426_s24, %s410_s25  }
  0xec PF: > { %s437_s5 = sand.u32 1, %s872_s12   ;;  %p651_p2 = pnand %p534_p6, %p999_p5 }
  0xed   : > { %s438_s8 = scalar_lea.sflag [#allocation4], %s437_s5 }
  0xee   : > { %p652_p4 = pneg %p651_p2 }
  0xf0   : > { %867 = dma.done.wait (%p652_p4), %s438_s8, 128  }
  0xf1   : > { %869 = vsyncadd (%p652_p4), %s438_s8, 4294967168  ;;  %s20_s17 = sadd.s32 1, %s892_s17   ;;  %s1078_s12 = smov %s876_s13 }
  0xf2   : > { %p17_p7 = scmp.ge.s32.totalorder %s20_s17, 4   ;;  %s1079_s13 = smov %s880_s14 }
  0xf3   : > { %s1080_s14 = smov %s997_s20  ;;  %s1081_s15 = smov %s888_s16 }
  0xf4   : > { %s1082_s16 = smov %s1084_s6  ;;  %19 = sbr.rel (!%p17_p7) target bundleno = 7 (0x7), region = 88 }
  0xf9   :  { %444 = vsyncpa [#allocation3], 1 }
  0xfa   :  { %446 = vsyncpa [#allocation3 + $0x1], 1 }
  0xfb   :  { %447 = vsyncpa [#allocation6], 1 }
  0xfc   :  { %448 = vsyncpa [#allocation4], 1 }
  0xfd   :  { %450 = vsyncpa [#allocation4 + $0x1], 1 }

</bundles_post_ra>
